<compile_context>
chip_gen: v7x
topology: tpu7x:2x2x1
jax: 0.10.0
libtpu: 0.0.40
codegen_flags: <defaults>
</compile_context>

<pallas_src>
import functools
import math

import jax
import jax.numpy as jnp
from jax.experimental import pallas as pl
from jax.experimental.pallas import tpu as pltpu


# ----------------------------------------------------------------------------
# Generation-aware VMEM budgets.
# ----------------------------------------------------------------------------
def _vmem_budgets():
    """Returns (vmem_limit_bytes, fused_block_bytes, tile_block_bytes)."""
    try:
        vmem_cap = int(pltpu.get_tpu_info().vmem_capacity_bytes)
    except Exception:
        vmem_cap = 64 * 1024 * 1024          # assume v7x-sized VMEM: safe everywhere
    vmem_limit = min((vmem_cap * 3) // 4, 96 * 1024 * 1024)   # 96 MiB v5e/v6e, 48 MiB v7x
    fused_block = min(vmem_limit // 6, 16 * 1024 * 1024)      # 16 MiB v5e/v6e,  8 MiB v7x
    tile_block = min(vmem_limit // 8, 12 * 1024 * 1024)       # 12 MiB v5e/v6e,  6 MiB v7x
    return vmem_limit, fused_block, tile_block


def _largest_fitting_divisor(B, per_item_bytes, budget_bytes):
    """Largest divisor bb of B with bb * per_item_bytes <= budget_bytes (>= 1)."""
    best = 1
    for bb in range(1, B + 1):
        if B % bb == 0 and bb * per_item_bytes <= budget_bytes:
            best = bb
    return best


def _choose_tile_hw(C, HW, itemsize, block_bytes):
    """Largest lane-dense HW tile (multiple of 128) with C*tile*itemsize <= block_bytes."""
    if C * HW * itemsize <= block_bytes:
        return HW
    tw = (block_bytes // (C * itemsize)) // 128 * 128
    # For extreme C even 128 lanes may exceed block_bytes; 128 is the smallest
    # lane-dense tile and is still far below the VMEM limit for any real C.
    tw = max(tw, 128)
    return min(tw, HW)


# ----------------------------------------------------------------------------
# Shared in-kernel helper: Conv1d(1,1,k, padding='same') along channels + sigmoid.
# pooled: (R, C) f32 with channels on the lane axis.  Returns (R, C) f32.
# ----------------------------------------------------------------------------
def _conv1d_same_sigmoid(pooled, w_ref, b_ref, k_size):
    R, C = pooled.shape
    pad = k_size // 2
    idx = jax.lax.broadcasted_iota(jnp.int32, (R, C), 1)
    acc = jnp.zeros((R, C), jnp.float32)
    for j in range(k_size):          # k is tiny and static (3 / 5 / 7)
        d = j - pad                  # out[c] += w[j] * pooled[c + d]
        shifted = pooled if d == 0 else pltpu.roll(pooled, shift=(-d) % C, axis=1)
        valid = (idx + d >= 0) & (idx + d < C)
        acc = acc + w_ref[j] * jnp.where(valid, shifted, 0.0)
    return jax.nn.sigmoid(acc + b_ref[0])


# ----------------------------------------------------------------------------
# Fused single-pass kernel: one (bb, C, HW) batch block per grid step.
# ----------------------------------------------------------------------------
def _eca_fused_kernel(w_ref, b_ref, x_ref, o_ref, *, k_size):
    x = x_ref[...]                                                 # (bb, C, HW)
    pooled = jnp.mean(x.astype(jnp.float32), axis=-1)              # (bb, C)
    gate = _conv1d_same_sigmoid(pooled, w_ref, b_ref, k_size)      # (bb, C) f32
    o_ref[...] = (x * gate[:, :, None].astype(x.dtype)).astype(o_ref.dtype)


# ----------------------------------------------------------------------------
# Pass 1 (fallback path): pooled-sum reduction over HW tiles + gate at last tile.
# ----------------------------------------------------------------------------
def _eca_pool_gate_kernel(w_ref, b_ref, x_ref, gate_ref, acc_ref, *,
                          k_size, hw_total, tile_hw):
    t = pl.program_id(1)
    nt = pl.num_programs(1)

    @pl.when(t == 0)
    def _init():
        acc_ref[...] = jnp.zeros_like(acc_ref)

    rem = hw_total % tile_hw
    if rem == 0:
        # All tiles are full: unmasked accumulate everywhere.
        acc_ref[...] += jnp.sum(x_ref[...].astype(jnp.float32), axis=-1)
    else:
        @pl.when(t < nt - 1)
        def _full_tile():
            acc_ref[...] += jnp.sum(x_ref[...].astype(jnp.float32), axis=-1)

        @pl.when(t == nt - 1)
        def _last_tile():  # mask padded lanes of the remainder tile only
            xf = x_ref[...].astype(jnp.float32)                    # (1, C, tile_hw)
            lane = jax.lax.broadcasted_iota(jnp.int32, xf.shape, 2)
            acc_ref[...] += jnp.sum(jnp.where(lane < rem, xf, 0.0), axis=-1)

    @pl.when(t == nt - 1)
    def _finalize():
        pooled = acc_ref[...] * (1.0 / float(hw_total))            # (1, C) full-HW mean
        gate = _conv1d_same_sigmoid(pooled, w_ref, b_ref, k_size)  # (1, C)
        gate_ref[...] = gate[:, None, :]                           # (1, 1, C), C on lanes


# ----------------------------------------------------------------------------
# Pass 2 (fallback path): scale lane-dense x tiles by the resident gate block.
# ----------------------------------------------------------------------------
def _eca_scale_kernel(gate_ref, x_ref, o_ref):
    x = x_ref[...]                                  # (1, C, tile_hw)
    g = gate_ref[0]                                 # (1, C), channels on lanes
    # In-kernel lane->sublane broadcast (same pattern as the fused kernel);
    # avoids any XLA relayout op between the two pallas_calls.
    o_ref[...] = (x * g[:, :, None].astype(x.dtype)).astype(o_ref.dtype)


# ----------------------------------------------------------------------------
# Wrapper
# ----------------------------------------------------------------------------
def eca_block(x, conv_w, conv_b, k_size, *, tile_hw=None, donate_x=False,
              vmem_limit_bytes=None, fused_block_bytes=None, block_bytes=None):
    """x: (B, C, H, W) NCHW. conv_w: (1, 1, k). conv_b: (1,)."""
    B, C, H, W = x.shape
    HW = H * W
    assert k_size % 2 == 1, "ECA k_size must be odd (the module formula guarantees it)"
    itemsize = jnp.dtype(x.dtype).itemsize
    x3 = x.reshape(B, C, HW)
    w_flat = conv_w.reshape(-1).astype(jnp.float32)
    b_flat = conv_b.reshape(-1).astype(jnp.float32)

    auto_limit, auto_fused, auto_tile = _vmem_budgets()
    vmem_limit_bytes = auto_limit if vmem_limit_bytes is None else vmem_limit_bytes
    fused_block_bytes = auto_fused if fused_block_bytes is None else fused_block_bytes
    block_bytes = auto_tile if block_bytes is None else block_bytes

    slice_bytes = C * HW * itemsize     # one batch slice

    # ---- primary path: single-pass fused kernel over batch blocks (2x HBM) ----
    if tile_hw is None and slice_bytes <= fused_block_bytes:
        bb = _largest_fitting_divisor(B, slice_bytes, fused_block_bytes)
        n_bb = B // bb
        out = pl.pallas_call(
            functools.partial(_eca_fused_kernel, k_size=k_size),
            out_shape=jax.ShapeDtypeStruct((B, C, HW), x.dtype),
            grid=(n_bb,),
            in_specs=[
                pl.BlockSpec(memory_space=pltpu.MemorySpace.SMEM),   # conv weights
                pl.BlockSpec(memory_space=pltpu.MemorySpace.SMEM),   # conv bias
                pl.BlockSpec((bb, C, HW), lambda i: (i, 0, 0)),
            ],
            out_specs=pl.BlockSpec((bb, C, HW), lambda i: (i, 0, 0)),
            compiler_params=pltpu.CompilerParams(
                dimension_semantics=("parallel",),
                vmem_limit_bytes=vmem_limit_bytes),
            cost_estimate=pl.CostEstimate(
                flops=2 * B * C * HW, transcendentals=B * C,
                bytes_accessed=2 * B * C * HW * itemsize),
            input_output_aliases=({2: 0} if donate_x else {}),
        )(w_flat, b_flat, x3)
        return out.reshape(B, C, H, W)

    # ---- fallback: two passes over lane-dense HW tiles (large per-batch slices) ----
    tw = tile_hw if tile_hw is not None else _choose_tile_hw(C, HW, itemsize,
                                                             block_bytes)
    tw = min(tw, HW)
    n_hw = -(-HW // tw)

    # Pass 1: pooled mean + channel conv + sigmoid -> gate (B, 1, C), f32.
    gate = pl.pallas_call(
        functools.partial(_eca_pool_gate_kernel, k_size=k_size,
                          hw_total=HW, tile_hw=tw),
        out_shape=jax.ShapeDtypeStruct((B, 1, C), jnp.float32),
        grid=(B, n_hw),
        in_specs=[
            pl.BlockSpec(memory_space=pltpu.MemorySpace.SMEM),       # conv weights
            pl.BlockSpec(memory_space=pltpu.MemorySpace.SMEM),       # conv bias
            pl.BlockSpec((1, C, tw), lambda b, t: (b, 0, t)),        # x tile
        ],
        out_specs=pl.BlockSpec((1, 1, C), lambda b, t: (b, 0, 0)),   # gate (resident)
        scratch_shapes=[pltpu.VMEM((1, C), jnp.float32)],            # pooled-sum acc
        compiler_params=pltpu.CompilerParams(
            dimension_semantics=("parallel", "arbitrary"),
            vmem_limit_bytes=vmem_limit_bytes),
        cost_estimate=pl.CostEstimate(
            flops=B * C * HW, transcendentals=B * C,
            bytes_accessed=B * C * HW * itemsize + B * C * 4),
    )(w_flat, b_flat, x3)

    # Pass 2: out = x * gate; both grid axes parallel (v7x megacore friendly).
    out = pl.pallas_call(
        _eca_scale_kernel,
        out_shape=jax.ShapeDtypeStruct((B, C, HW), x.dtype),
        grid=(B, n_hw),
        in_specs=[
            pl.BlockSpec((1, 1, C), lambda b, t: (b, 0, 0)),         # gate (resident)
            pl.BlockSpec((1, C, tw), lambda b, t: (b, 0, t)),        # x tile
        ],
        out_specs=pl.BlockSpec((1, C, tw), lambda b, t: (b, 0, t)),
        compiler_params=pltpu.CompilerParams(
            dimension_semantics=("parallel", "parallel"),
            vmem_limit_bytes=vmem_limit_bytes),
        cost_estimate=pl.CostEstimate(
            flops=B * C * HW, transcendentals=0,
            bytes_accessed=2 * B * C * HW * itemsize + B * C * 4),
        input_output_aliases=({1: 0} if donate_x else {}),
    )(gate, x3)
    return out.reshape(B, C, H, W)


# ----------------------------------------------------------------------------
# Plain-JAX reference mirroring the PyTorch forward.
# ----------------------------------------------------------------------------
def eca_reference(x, conv_w, conv_b, k_size):
    pooled = jnp.mean(x.astype(jnp.float32), axis=(2, 3))            # (B, C)
    pad = k_size // 2
    padded = jnp.pad(pooled, ((0, 0), (pad, pad)))
    w = conv_w.reshape(-1)
    conv = sum(w[j] * padded[:, j:j + pooled.shape[1]] for j in range(k_size))
    conv = conv + conv_b[0]
    gate = jax.nn.sigmoid(conv)
    return (x * gate[:, :, None, None].astype(x.dtype)).astype(x.dtype)


if __name__ == "__main__":
    # Module-consistent small shapes: C chosen so k_size = 3 (nontrivial conv).
    B, C, H, W = 2, 16, 16, 16
    gamma, bias = 2, 1
    k_size = int(abs(math.log(C, 2) + bias) / gamma)
    k_size = k_size if k_size % 2 else k_size + 1     # -> 3 for C=16

    key = jax.random.PRNGKey(0)
    kx, kw, kb, kx2 = jax.random.split(key, 4)
    x = jax.random.normal(kx, (B, C, H, W), dtype=jnp.float32)
    # Deterministic Conv1d(1, 1, k) params (PyTorch-style uniform fan-in init).
    bound = 1.0 / math.sqrt(k_size)
    conv_w = jax.random.uniform(kw, (1, 1, k_size), jnp.float32, -bound, bound)
    conv_b = jax.random.uniform(kb, (1,), jnp.float32, -bound, bound)

    # 1) Primary fused single-pass path (multi-batch block, grid over batch blocks).
    out = jax.block_until_ready(eca_block(x, conv_w, conv_b, k_size))
    ref = eca_reference(x, conv_w, conv_b, k_size)
    assert out.shape == x.shape and out.dtype == x.dtype
    assert jnp.allclose(out, ref, atol=1e-5, rtol=1e-5)

    # 2) Two-pass HW-tiled fallback, forced small tile so it exercises multi-tile
    #    accumulation plus the masked remainder tile (HW = 12*20 = 240, tile 128).
    x2 = jax.random.normal(kx2, (B, C, 12, 20), dtype=jnp.float32)
    out2 = jax.block_until_ready(
        eca_block(x2, conv_w, conv_b, k_size, tile_hw=128))
    ref2 = eca_reference(x2, conv_w, conv_b, k_size)
    assert out2.shape == x2.shape and out2.dtype == x2.dtype
    assert jnp.allclose(out2, ref2, atol=1e-5, rtol=1e-5)

    print("KERNEL_OK")
</pallas_src>

<mosaic_0001>
module attributes {stable_mosaic.version = 11 : i64} {
  func.func @_eca_fused_kernel(%arg0: i32, %arg1: memref<3xf32, #tpu.memory_space<smem>>, %arg2: memref<1xf32, #tpu.memory_space<smem>>, %arg3: memref<2x16x256xf32, #tpu.memory_space<vmem>>, %arg4: memref<2x16x256xf32, #tpu.memory_space<vmem>>) attributes {dimension_semantics = [#tpu.dimension_semantics<parallel>], iteration_bounds = array<i64: 1>, scalar_prefetch = 0 : i64, scratch_operands = 0 : i64, tpu.core_type = #tpu.core_type<tc>, window_params = [{transform_indices = @transform_0, window_bounds = array<i64: 3>}, {transform_indices = @transform_1, window_bounds = array<i64: 1>}, {transform_indices = @transform_2, window_bounds = array<i64: 2, 16, 256>}, {transform_indices = @transform_3, window_bounds = array<i64: 2, 16, 256>}]} {
    %c0 = arith.constant 0 : index
    %c0_0 = arith.constant 0 : index
    %c0_1 = arith.constant 0 : index
    %0 = vector.load %arg3[%c0, %c0_0, %c0_1] : memref<2x16x256xf32, #tpu.memory_space<vmem>>, vector<2x16x256xf32>
    %cst = arith.constant dense<0.000000e+00> : vector<2x16xf32>
    %1 = vector.multi_reduction <add>, %0, %cst [2] : vector<2x16x256xf32> to vector<2x16xf32>
    %cst_2 = arith.constant 2.560000e+02 : f32
    %2 = vector.broadcast %cst_2 : f32 to vector<2x16xf32>
    %3 = arith.divf %1, %2 : vector<2x16xf32>
    %4 = tpu.iota {dimensions = array<i32: 1>} : vector<2x16xi32>
    %cst_3 = arith.constant 0.000000e+00 : f32
    %5 = vector.broadcast %cst_3 : f32 to vector<2x16xf32>
    %c1_i32 = arith.constant 1 : i32
    %6 = tpu.dynamic_rotate %3 by %c1_i32 dim 1 : vector<2x16xf32>, i32 -> vector<2x16xf32>
    %c-1_i32 = arith.constant -1 : i32
    %7 = vector.broadcast %c-1_i32 : i32 to vector<2x16xi32>
    %8 = arith.addi %4, %7 : vector<2x16xi32>
    %c0_i32 = arith.constant 0 : i32
    %9 = vector.broadcast %c0_i32 : i32 to vector<2x16xi32>
    %10 = arith.cmpi sge, %8, %9 : vector<2x16xi32>
    %c-1_i32_4 = arith.constant -1 : i32
    %11 = vector.broadcast %c-1_i32_4 : i32 to vector<2x16xi32>
    %12 = arith.addi %4, %11 : vector<2x16xi32>
    %c16_i32 = arith.constant 16 : i32
    %13 = vector.broadcast %c16_i32 : i32 to vector<2x16xi32>
    %14 = arith.cmpi slt, %12, %13 : vector<2x16xi32>
    %15 = arith.andi %10, %14 : vector<2x16xi1>
    %c0_5 = arith.constant 0 : index
    %16 = memref.load %arg1[%c0_5] : memref<3xf32, #tpu.memory_space<smem>>
    %cst_6 = arith.constant 0.000000e+00 : f32
    %17 = vector.broadcast %cst_6 : f32 to vector<2x16xf32>
    %18 = arith.select %15, %6, %17 : vector<2x16xi1>, vector<2x16xf32>
    %19 = vector.broadcast %16 : f32 to vector<2x16xf32>
    %20 = arith.mulf %19, %18 : vector<2x16xf32>
    %21 = arith.addf %5, %20 : vector<2x16xf32>
    %c0_i32_7 = arith.constant 0 : i32
    %22 = vector.broadcast %c0_i32_7 : i32 to vector<2x16xi32>
    %23 = arith.addi %4, %22 : vector<2x16xi32>
    %c0_i32_8 = arith.constant 0 : i32
    %24 = vector.broadcast %c0_i32_8 : i32 to vector<2x16xi32>
    %25 = arith.cmpi sge, %23, %24 : vector<2x16xi32>
    %c0_i32_9 = arith.constant 0 : i32
    %26 = vector.broadcast %c0_i32_9 : i32 to vector<2x16xi32>
    %27 = arith.addi %4, %26 : vector<2x16xi32>
    %c16_i32_10 = arith.constant 16 : i32
    %28 = vector.broadcast %c16_i32_10 : i32 to vector<2x16xi32>
    %29 = arith.cmpi slt, %27, %28 : vector<2x16xi32>
    %30 = arith.andi %25, %29 : vector<2x16xi1>
    %c1 = arith.constant 1 : index
    %31 = memref.load %arg1[%c1] : memref<3xf32, #tpu.memory_space<smem>>
    %cst_11 = arith.constant 0.000000e+00 : f32
    %32 = vector.broadcast %cst_11 : f32 to vector<2x16xf32>
    %33 = arith.select %30, %3, %32 : vector<2x16xi1>, vector<2x16xf32>
    %34 = vector.broadcast %31 : f32 to vector<2x16xf32>
    %35 = arith.mulf %34, %33 : vector<2x16xf32>
    %36 = arith.addf %21, %35 : vector<2x16xf32>
    %c15_i32 = arith.constant 15 : i32
    %37 = tpu.dynamic_rotate %3 by %c15_i32 dim 1 : vector<2x16xf32>, i32 -> vector<2x16xf32>
    %c1_i32_12 = arith.constant 1 : i32
    %38 = vector.broadcast %c1_i32_12 : i32 to vector<2x16xi32>
    %39 = arith.addi %4, %38 : vector<2x16xi32>
    %c0_i32_13 = arith.constant 0 : i32
    %40 = vector.broadcast %c0_i32_13 : i32 to vector<2x16xi32>
    %41 = arith.cmpi sge, %39, %40 : vector<2x16xi32>
    %c1_i32_14 = arith.constant 1 : i32
    %42 = vector.broadcast %c1_i32_14 : i32 to vector<2x16xi32>
    %43 = arith.addi %4, %42 : vector<2x16xi32>
    %c16_i32_15 = arith.constant 16 : i32
    %44 = vector.broadcast %c16_i32_15 : i32 to vector<2x16xi32>
    %45 = arith.cmpi slt, %43, %44 : vector<2x16xi32>
    %46 = arith.andi %41, %45 : vector<2x16xi1>
    %c2 = arith.constant 2 : index
    %47 = memref.load %arg1[%c2] : memref<3xf32, #tpu.memory_space<smem>>
    %cst_16 = arith.constant 0.000000e+00 : f32
    %48 = vector.broadcast %cst_16 : f32 to vector<2x16xf32>
    %49 = arith.select %46, %37, %48 : vector<2x16xi1>, vector<2x16xf32>
    %50 = vector.broadcast %47 : f32 to vector<2x16xf32>
    %51 = arith.mulf %50, %49 : vector<2x16xf32>
    %52 = arith.addf %36, %51 : vector<2x16xf32>
    %c0_17 = arith.constant 0 : index
    %53 = memref.load %arg2[%c0_17] : memref<1xf32, #tpu.memory_space<smem>>
    %54 = vector.broadcast %53 : f32 to vector<2x16xf32>
    %55 = arith.addf %52, %54 : vector<2x16xf32>
    %56 = arith.negf %55 : vector<2x16xf32>
    %57 = math.exp %56 : vector<2x16xf32>
    %cst_18 = arith.constant 1.000000e+00 : f32
    %58 = vector.broadcast %cst_18 : f32 to vector<2x16xf32>
    %59 = arith.addf %58, %57 : vector<2x16xf32>
    %60 = arith.divf %58, %59 : vector<2x16xf32>
    %61 = vector.shape_cast %60 : vector<2x16xf32> to vector<2x16x1xf32>
    %62 = vector.broadcast %61 : vector<2x16x1xf32> to vector<2x16x256xf32>
    %63 = arith.mulf %0, %62 : vector<2x16x256xf32>
    %c0_19 = arith.constant 0 : index
    %c0_20 = arith.constant 0 : index
    %c0_21 = arith.constant 0 : index
    %64 = vector.load %arg4[%c0_19, %c0_20, %c0_21] : memref<2x16x256xf32, #tpu.memory_space<vmem>>, vector<2x16x256xf32>
    tpu.vector_store %arg4[%c0_19, %c0_20, %c0_21], %63 {strides = array<i32>} : memref<2x16x256xf32, #tpu.memory_space<vmem>>, vector<2x16x256xf32>,
    return
  }
  func.func @transform_0(%arg0: i32) -> i32 {
    %c0_i32 = arith.constant 0 : i32
    %c0_i32_0 = arith.constant 0 : i32
    return %c0_i32 : i32
  }
  func.func @transform_1(%arg0: i32) -> i32 {
    %c0_i32 = arith.constant 0 : i32
    %c0_i32_0 = arith.constant 0 : i32
    return %c0_i32 : i32
  }
  func.func @transform_2(%arg0: i32) -> (i32, i32, i32) {
    %c0_i32 = arith.constant 0 : i32
    %c0_i32_0 = arith.constant 0 : i32
    %c0_i32_1 = arith.constant 0 : i32
    return %arg0, %c0_i32, %c0_i32_0 : i32, i32, i32
  }
  func.func @transform_3(%arg0: i32) -> (i32, i32, i32) {
    %c0_i32 = arith.constant 0 : i32
    %c0_i32_0 = arith.constant 0 : i32
    %c0_i32_1 = arith.constant 0 : i32
    return %arg0, %c0_i32, %c0_i32_0 : i32, i32, i32
  }
}

</mosaic_0001>

<bundles_post_ra>
// kernel: tpu_custom_call.1
= control target key start
LH: loop header
LB: loop body
LE: loop exit
PB: predicated region body
PF: predicated region fallthrough
CT: control target
= control target key end

     0   :  { %9 = vsyncpa [#allocation6], 0  ;;  %s381_s0 = inlined_call_operand.vmem [shape: f32[3], index: 0, kind: input, shape index: {}]   ;;  %s382_s1 = inlined_call_operand.<no memory space> [shape: f32[1], index: 1, kind: input, shape index: {}]   ;;  %s383_s2 = inlined_call_operand.hbm [shape: f32[2,16,256], index: 2, kind: input, shape index: {}]   ;;  %s384_s3 = inlined_call_operand.hbm [shape: f32[2,16,256], index: 3, kind: output, shape index: {}]  }
   0x1   :  { %10 = vsyncpa [#allocation4], 0 }
   0x2   :  { %11 = vsyncpa [#allocation5], 0  ;;  %s18_s14 = sshll.u32 %s381_s0, 4  ;;  %s19_s14 = int_to_ptr.vmem [resolvable:$true] %s18_s14 }
   0x3   :  { %s216_s15 = scalar_lea.vmem %s19_s14, 16  ;;  %p221_p1 = scmp.lt.s32.totalorder %s19_s14, %s19_s14 }
   0x4   :  { %p217_p0 = scmp.ne.s32.totalorder %s19_s14, %s216_s15  ;;  %p222_p2 = scmp.lt.s32.totalorder %s216_s15, %s216_s15 }
   0x6   :  { %p223_p3 = por %p222_p2, %p221_p1 }
   0x8   :  { %p224_p4 = pnand %p223_p3, %p217_p0 }
   0xa   :  { %227 = shalt.err (!%p224_p4)
}
   0xb   :  { %s278_s16 = smov [#allocation3]   ;;  %s279_s17 = smov [#allocation7]  }
   0xc   :  { %21 = dma.vmem_to_smem %s19_s14, 16, %s278_s16, [#allocation6]  }
   0xd   :  { %s29_s18 = sshll.u32 %s279_s17, 4  ;;  %s228_s21 = scalar_lea.hbm %s383_s2, 1024  ;;  %s30_s18 = int_to_ptr.vmem [resolvable:$true] %s29_s18 }
   0xe   :  { %p229_p5 = scmp.ne.s32.totalorder %s383_s2, %s228_s21  ;;  %p232_p6 = scmp.lt.u32.totalorder %s228_s21, %s383_s2 }
  0x10   :  { %p234_p7 = pnand %p232_p6, %p229_p5 }
  0x12   :  { %237 = shalt.err (!%p234_p7)
}
  0x13   :  { %s238_s25 = scalar_lea.vmem %s30_s18, 1024  ;;  %p243_p9 = scmp.lt.s32.totalorder %s30_s18, %s30_s18 }
  0x14   :  { %p239_p8 = scmp.ne.s32.totalorder %s30_s18, %s238_s25  ;;  %p244_p10 = scmp.lt.s32.totalorder %s238_s25, %s238_s25 }
  0x16   :  { %p245_p11 = por %p244_p10, %p243_p9 }
  0x18   :  { %p246_p12 = pnand %p245_p11, %p239_p8 }
  0x1a   :  { %249 = shalt.err (!%p246_p12)
}
  0x1b   :  { %s280_s26 = smov 256   ;;  %s281_s27 = smov 16  }
  0x1c   :  { %35 = dma.hbm_to_vmem [thread:$0]  %s383_s2, 1024, %s30_s18, [#allocation4], %s280_s26, %s280_s26, %s281_s27  }
  0x1d   :  { %272 = dma.done.wait [#allocation6], 16  }
  0x1e   :  { %273 = vsyncadd [#allocation6], 4294967280 }
  0x1f   :  { %274 = dma.done.wait [#allocation4], 1024  }
  0x20   :  { %275 = vsyncadd [#allocation4], 4294966272 }
  0x21   :  { %42 = sfence }
  0x22   :  { %v323_v0 = vld [vmem:[#allocation7 + $0x20] sm:$0xff]  ;;  %v325_v1 = vld [vmem:[#allocation7 + $0x28] sm:$0xff]  ;;  %v333_v5 = vld [vmem:[#allocation7 + $0x30] sm:$0xff]  ;;  %v68_v12 = vlaneseq  ;;  %vm83_vm0 = vcmask 130112   ;;  %vm94_vm1 = vcmask 1041409   ;;  %vm97_vm2 = vcmask 1047680  }
  0x23   :  { %v327_v2 = vld [vmem:[#allocation7] sm:$0xff]  ;;  %v57_v3 = vadd.f32 %v325_v1, %v323_v0  ;;  %v331_v4 = vld [vmem:[#allocation7 + $0x8] sm:$0xff]  ;;  %v335_v6 = vld [vmem:[#allocation7 + $0x38] sm:$0xff]  ;;  %s282_s2 = smov 113   ;;  %s283_s30 = smov 127   ;;  %v138_v51 = vstv %s382_s1 }
  0x24   :  { %v51_v7 = vadd.f32 %v331_v4, %v327_v2  ;;  %v339_v8 = vld [vmem:[#allocation7 + $0x10] sm:$0xff]  ;;  %v341_v9 = vld [vmem:[#allocation7 + $0x18] sm:$0xff]  ;;  %v60_v10 = vadd.f32 %v335_v6, %v333_v5  ;;  %v69_v13 = vand.u32 127, %v68_v12  ;;  %v347_v14 = vshrl.u32 %v68_v12, 7  ;;  %s108_s4 = sld [smem:[#allocation3]]  ;;  %s202_s5 = sld [smem:[#allocation3 + $0x1]] }
  0x25   :  { %58 = vadd.xlane.f32.xlu1 %v57_v3  ;;  %v54_v11 = vadd.f32 %v341_v9, %v339_v8  ;;  %s203_s6 = sld [smem:[#allocation3 + $0x2]]  ;;  %s284_s1 = smov [#allocation8]  }
  0x26   :  { %52 = vadd.xlane.f32.xlu0 %v51_v7  ;;  %v78_v15 = vadd.s32 4294967288, %v69_v13  ;;  %v76_v18 = vsub.s32 %v69_v13, %v347_v14  ;;  %v104_v37 = vadd.s32 4294967295, %v69_v13  ;;  %vm118_vm6 = vcmp.lt.s32.totalorder %v69_v13, 16  ;;  %s189_s9 = sshll.u32 %s284_s1, 4  ;;  %s190_s9 = int_to_ptr.vmem [resolvable:$true] %s189_s9 }
  0x27   :  { %v125_v38 = vadd.s32 1, %v69_v13  ;;  %v148_v57 = vsub.s32 0, %v347_v14  ;;  %v159_v60 = vsub.s32 1, %v347_v14  ;;  %s250_s10 = scalar_lea.vmem %s190_s9, 1024  ;;  %p255_p0 = scmp.lt.s32.totalorder %s190_s9, %s190_s9 }
  0x28   :  { %v81_v20 = vsub.s32 %v78_v15, %v347_v14  ;;  %vm105_vm3 = vcmp.ge.s32.totalorder %v104_v37, 0  ;;  %vm106_vm4 = vcmp.lt.s32.totalorder %v104_v37, 16  ;;  %p251_p13 = scmp.ne.s32.totalorder %s190_s9, %s250_s10  ;;  %p256_p1 = scmp.lt.s32.totalorder %s250_s10, %s250_s10 }
  0x29   :  { %61 = vadd.xlane.f32.xlu1 %v60_v10  ;;  %vm107_vm5 = vmand %vm105_vm3, %vm106_vm4  ;;  %vm127_vm7 = vcmp.lt.s32.totalorder %v125_v38, 16 }
  0x2a   :  { %55 = vadd.xlane.f32.xlu0 %v54_v11  ;;  %v114_v39 = vstv %s108_s4  ;;  %v122_v41 = vstv %s202_s5  ;;  %p257_p2 = por %p256_p1, %p255_p0 }
  0x2b   :  { %v134_v45 = vstv %s203_s6 }
  0x2c   :  { %p258_p3 = pnand %p257_p2, %p251_p13 }
  0xb2   :  { %v59_v16 = vpop.xlane.xlu1 %58 }
  0xb3   :  { %v53_v17 = vpop.xlane.xlu0 %52  ;;  %v66_v19 = vmul.f32 0.00390625, %v59_v16 }
  0xb4   :  { %v64_v21 = vmul.f32 0.00390625, %v53_v17 }
  0xb5   :  { %v88_v26 = vrot.slane %v66_v19, %v76_v18 }
  0xb6   :  { %v62_v22 = vpop.xlane.xlu1 %61  ;;  %v77_v28 = vrot.slane %v64_v21, %v76_v18 }
  0xb7   :  { %v67_v23 = vmul.f32 0.00390625, %v62_v22  ;;  %v56_v24 = vpop.xlane.xlu0 %55 }
  0xb8   :  { %v65_v25 = vmul.f32 0.00390625, %v56_v24 }
  0xb9   :  { %v92_v27 = vrot.slane %v67_v23, %v81_v20 }
  0xba   :  { %v82_v29 = vrot.slane %v65_v25, %v81_v20 }
  0xbb   :  { %v93_v30 = vsel %vm83_vm0, %v92_v27, %v88_v26 }
  0xbc   :  { %v84_v31 = vsel %vm83_vm0, %v82_v29, %v77_v28 }
  0xbd   :  { %v95_v32 = vsel %vm94_vm1, %v93_v30, %v84_v31 }
  0xbe   :  { %98 = vrot.lane.b32.xlu0 %v95_v32, %s281_s27  ;;  %v121_v43 = vsel %vm118_vm6, %v95_v32, 0.0 }
  0xbf   :  { %v123_v46 = vmul.f32 %v122_v41, %v121_v43 }
 0x130   :  { %v99_v33 = vpop.permute.xlu0 %98 }
 0x131   :  { %v100_v34 = vsel %vm97_vm2, %v99_v33, %v95_v32 }
 0x132   :  { %101 = vrot.lane.b32.xlu1 %v100_v34, %s281_s27 }
 0x1a4   :  { %v102_v35 = vpop.permute.xlu1 %101 }
 0x1a5   :  { %v103_v36 = vsel %vm97_vm2, %v102_v35, %v95_v32 }
 0x1a6   :  { %110 = vrot.lane.b32.xlu1 %v103_v36, %s282_s2 }
 0x1aa   :  { %130 = vrot.lane.b32.xlu1 %v103_v36, %s283_s30 }
 0x218   :  { %v111_v40 = vpop.permute.xlu1 %110 }
 0x219   :  { %v113_v42 = vsel %vm107_vm5, %v111_v40, 0.0 }
 0x21a   :  { %v115_v44 = vmul.f32 %v114_v39, %v113_v42 }
 0x21c   :  { %v131_v47 = vpop.permute.xlu1 %130  ;;  %v124_v49 = vadd.f32 %v123_v46, %v115_v44 }
 0x21d   :  { %v133_v48 = vsel %vm127_vm7, %v131_v47, 0.0 }
 0x21e   :  { %v135_v50 = vmul.f32 %v134_v45, %v133_v48 }
 0x220   :  { %v136_v52 = vadd.f32 %v135_v50, %v124_v49 }
 0x222   :  { %v139_v53 = vadd.f32 %v138_v51, %v136_v52 }
 0x224   :  { %v204_v54 = vmul.f32 -1.442695, %v139_v53 }
 0x226   :  { %212 = vpow2.f32 %v204_v54 }
 0x230   :  { %v213_v55 = vpop.eup %212 }
 0x231   :  { %v143_v56 = vadd.f32 1.0, %v213_v55 }
 0x233   :  { %214 = vrcp.f32 %v143_v56 }
 0x23d   :  { %v215_v58 = vpop.eup %214 }
 0x23e   :  { %v149_v59 = vrot.slane %v215_v58, %v148_v57  ;;  %v160_v61 = vrot.slane %v215_v58, %v159_v60 }
 0x240   :  { %155 = vbcast.lane.b32.xlu1 %v149_v59, 264  ;;  %151 = vbcast.lane.b32.xlu0 %v149_v59, 256 }
 0x244   :  { %166 = vbcast.lane.b32.xlu1 %v160_v61, 264  ;;  %162 = vbcast.lane.b32.xlu0 %v160_v61, 256 }
 0x2b2   :  { %v156_v62 = vpop.permute.xlu1 %155  ;;  %v152_v63 = vpop.permute.xlu0 %151 }
 0x2b3   :  { %v170_v3 = vmul.f32 %v156_v62, %v339_v8  ;;  %v171_v7 = vmul.f32 %v156_v62, %v341_v9  ;;  %v168_v10 = vmul.f32 %v152_v63, %v327_v2  ;;  %v169_v11 = vmul.f32 %v152_v63, %v331_v4 }
 0x2b5   :  { %178 = vst [vmem:[#allocation8 + $0x10] sm:$0xff] %v170_v3  ;;  %179 = vst [vmem:[#allocation8 + $0x18] sm:$0xff] %v171_v7 }
 0x2b6   :  { %176 = vst [vmem:[#allocation8] sm:$0xff] %v168_v10  ;;  %177 = vst [vmem:[#allocation8 + $0x8] sm:$0xff] %v169_v11  ;;  %v167_v12 = vpop.permute.xlu1 %166  ;;  %v163_v13 = vpop.permute.xlu0 %162 }
 0x2b7   :  { %v174_v14 = vmul.f32 %v167_v12, %v333_v5  ;;  %v175_v15 = vmul.f32 %v167_v12, %v335_v6  ;;  %v172_v8 = vmul.f32 %v163_v13, %v323_v0  ;;  %v173_v9 = vmul.f32 %v163_v13, %v325_v1 }
 0x2b9   :  { %182 = vst [vmem:[#allocation8 + $0x30] sm:$0xff] %v174_v14  ;;  %183 = vst [vmem:[#allocation8 + $0x38] sm:$0xff] %v175_v15 }
 0x2ba   :  { %180 = vst [vmem:[#allocation8 + $0x20] sm:$0xff] %v172_v8  ;;  %181 = vst [vmem:[#allocation8 + $0x28] sm:$0xff] %v173_v9 }
 0x2bb   :  { %261 = shalt.err (!%p258_p3)
}
 0x2bc   :  { %s262_s13 = scalar_lea.hbm %s384_s3, 1024 }
 0x2bd   :  { %p263_p4 = scmp.ne.s32.totalorder %s384_s3, %s262_s13  ;;  %p266_p5 = scmp.lt.u32.totalorder %s262_s13, %s384_s3 }
 0x2bf   :  { %p268_p6 = pnand %p266_p5, %p263_p4 }
 0x2c1   :  { %271 = shalt.err (!%p268_p6)
}
 0x2c2   :  { %195 = dma.vmem_to_hbm [thread:$0]  %s190_s9, 1024, %s384_s3, [#allocation5], %s280_s26, %s280_s26, %s281_s27  }
 0x2c3   :  { %276 = dma.done.wait [#allocation5], 1024  }
 0x2c4   :  { %277 = vsyncadd [#allocation5], 4294966272 }
 0x2c5   :  { %199 = vsyncpa [#allocation4], 1 }
 0x2c6   :  { %200 = vsyncpa [#allocation5], 1 }
 0x2c7   :  { %201 = vsyncpa [#allocation6], 1 }

</bundles_post_ra>
